<compile_context>
chip_gen: v7x
topology: tpu7x:2x2x1
jax: 0.10.0
libtpu: 0.0.40
codegen_flags: <defaults>
</compile_context>

<pallas_src>
import math

import jax
import jax.numpy as jnp
from jax.experimental import pallas as pl
from jax.experimental.pallas import tpu as pltpu


def _affine_kernel(x_ref, alpha_ref, beta_ref, o_ref):
    # Elementwise hot path; (1, tl) params broadcast over the (tr, tl) tile on the VPU.
    o_ref[...] = (x_ref[...] * alpha_ref[...] + beta_ref[...]).astype(o_ref.dtype)


def affine(x, alpha, beta, *, target_block_bytes=2 * 1024 * 1024):
    """x: (B, N, C); alpha, beta broadcastable to (1, 1, C). Returns x * alpha + beta."""
    B, N, C = x.shape
    out_dtype = x.dtype
    itemsize = jnp.dtype(out_dtype).itemsize
    sublane = max(8, 32 // itemsize)            # 8 for f32, 16 for bf16, 32 for int8

    # Params in the compute/output dtype (avoids f32 promotion / wide stores).
    a = alpha.reshape(-1).astype(out_dtype)
    b = beta.reshape(-1).astype(out_dtype)

    # ---- Lane-dense 2-D layout: (rows, lane) with lane % 128 == 0 when possible.
    total = B * N * C
    lane_dense = (C * 128) // math.gcd(C, 128)  # lcm(C, 128): exact channel period, 128-aligned
    if total % lane_dense == 0:
        lane = lane_dense
    else:
        lane = C                                # fallback: full-C last dim (still legal)
        # TODO(synk): C not 128-friendly and lcm doesn't divide B*N*C -> masked stores remain.
    reps = lane // C
    rows = total // lane
    x2 = x.reshape(rows, lane)                  # contiguous reshape: free in XLA
    a2 = jnp.tile(a, reps).reshape(1, lane)     # exact broadcast: lane % C == 0
    b2 = jnp.tile(b, reps).reshape(1, lane)

    # ---- Lane tile: bound so even the minimum row chunk (sublane) fits the block budget.
    max_tl_bytes = max(128 * itemsize, target_block_bytes // sublane)
    if lane % 128 == 0 and lane * itemsize > max_tl_bytes:
        tl = max(128, (max_tl_bytes // itemsize) // 128 * 128)
        tl = min(tl, lane)
        while lane % tl != 0:                   # terminates: 128 always divides lane here
            tl -= 128
    else:
        tl = lane

    # ---- Row-chunk size: ~target_block_bytes per block, multiple of `sublane`.
    tr = (target_block_bytes // (tl * itemsize)) // sublane * sublane
    tr = max(sublane, tr)
    if rows < sublane:
        tr = rows                               # tiny input: one full-extent block
    else:
        tr = min(tr, (rows // sublane) * sublane)

    grid = (pl.cdiv(rows, tr), pl.cdiv(lane, tl))   # partial edge blocks are masked by Pallas

    out2 = pl.pallas_call(
        _affine_kernel,
        out_shape=jax.ShapeDtypeStruct((rows, lane), out_dtype),
        grid=grid,
        in_specs=[
            pl.BlockSpec((tr, tl), lambda i, j: (i, j)),   # streaming x tiles
            pl.BlockSpec((1, tl), lambda i, j: (0, j)),    # alpha (tiny, lane-sliced)
            pl.BlockSpec((1, tl), lambda i, j: (0, j)),    # beta
        ],
        out_specs=pl.BlockSpec((tr, tl), lambda i, j: (i, j)),
        compiler_params=pltpu.CompilerParams(
            dimension_semantics=("parallel", "parallel"),  # megacore-splittable on v7x
        ),
    )(x2, a2, b2)
    return out2.reshape(B, N, C)


if __name__ == "__main__":
    # Small shapes consistent with the module's (batch, seq, channel) usage.
    B, N, C = 2, 8, 32

    key = jax.random.PRNGKey(0)
    x = jax.random.normal(key, (B, N, C), dtype=jnp.float32)

    # Deterministic params matching nn.Parameter(torch.ones/zeros(1, 1, C)),
    # perturbed deterministically so the affine transform is non-trivial.
    alpha = jnp.ones((1, 1, C), dtype=jnp.float32) \
        + 0.1 * jnp.arange(C, dtype=jnp.float32).reshape(1, 1, C)
    beta = jnp.zeros((1, 1, C), dtype=jnp.float32) \
        + 0.01 * jnp.arange(C, dtype=jnp.float32).reshape(1, 1, C)

    out = jax.block_until_ready(affine(x, alpha, beta))

    # Correctness check against the plain-JAX reference.
    ref = x * alpha + beta
    assert out.shape == x.shape and out.dtype == x.dtype
    assert jnp.allclose(out, ref, atol=1e-6, rtol=1e-6), "mismatch vs reference"

    print("KERNEL_OK")
</pallas_src>

<mosaic_0001>
module attributes {stable_mosaic.version = 11 : i64} {
  func.func @_affine_kernel(%arg0: i32, %arg1: i32, %arg2: memref<4x128xf32, #tpu.memory_space<vmem>>, %arg3: memref<1x128xf32, #tpu.memory_space<vmem>>, %arg4: memref<1x128xf32, #tpu.memory_space<vmem>>, %arg5: memref<4x128xf32, #tpu.memory_space<vmem>>) attributes {dimension_semantics = [#tpu.dimension_semantics<parallel>, #tpu.dimension_semantics<parallel>], iteration_bounds = array<i64: 1, 1>, scalar_prefetch = 0 : i64, scratch_operands = 0 : i64, tpu.core_type = #tpu.core_type<tc>, window_params = [{transform_indices = @transform_0, window_bounds = array<i64: 4, 128>}, {transform_indices = @transform_1, window_bounds = array<i64: 1, 128>}, {transform_indices = @transform_2, window_bounds = array<i64: 1, 128>}, {transform_indices = @transform_3, window_bounds = array<i64: 4, 128>}]} {
    %c0 = arith.constant 0 : index
    %c0_0 = arith.constant 0 : index
    %0 = vector.load %arg2[%c0, %c0_0] : memref<4x128xf32, #tpu.memory_space<vmem>>, vector<4x128xf32>
    %c0_1 = arith.constant 0 : index
    %c0_2 = arith.constant 0 : index
    %1 = vector.load %arg3[%c0_1, %c0_2] : memref<1x128xf32, #tpu.memory_space<vmem>>, vector<1x128xf32>
    %2 = vector.broadcast %1 : vector<1x128xf32> to vector<4x128xf32>
    %3 = arith.mulf %0, %2 : vector<4x128xf32>
    %c0_3 = arith.constant 0 : index
    %c0_4 = arith.constant 0 : index
    %4 = vector.load %arg4[%c0_3, %c0_4] : memref<1x128xf32, #tpu.memory_space<vmem>>, vector<1x128xf32>
    %5 = vector.broadcast %4 : vector<1x128xf32> to vector<4x128xf32>
    %6 = arith.addf %3, %5 : vector<4x128xf32>
    %c0_5 = arith.constant 0 : index
    %c0_6 = arith.constant 0 : index
    %7 = vector.load %arg5[%c0_5, %c0_6] : memref<4x128xf32, #tpu.memory_space<vmem>>, vector<4x128xf32>
    tpu.vector_store %arg5[%c0_5, %c0_6], %6 {strides = array<i32>} : memref<4x128xf32, #tpu.memory_space<vmem>>, vector<4x128xf32>,
    return
  }
  func.func @transform_0(%arg0: i32, %arg1: i32) -> (i32, i32) {
    %c0_i32 = arith.constant 0 : i32
    return %arg0, %arg1 : i32, i32
  }
  func.func @transform_1(%arg0: i32, %arg1: i32) -> (i32, i32) {
    %c0_i32 = arith.constant 0 : i32
    %c0_i32_0 = arith.constant 0 : i32
    return %c0_i32, %arg1 : i32, i32
  }
  func.func @transform_2(%arg0: i32, %arg1: i32) -> (i32, i32) {
    %c0_i32 = arith.constant 0 : i32
    %c0_i32_0 = arith.constant 0 : i32
    return %c0_i32, %arg1 : i32, i32
  }
  func.func @transform_3(%arg0: i32, %arg1: i32) -> (i32, i32) {
    %c0_i32 = arith.constant 0 : i32
    return %arg0, %arg1 : i32, i32
  }
}

</mosaic_0001>

<bundles_post_ra>
// kernel: tpu_custom_call.1
= control target key start
LH: loop header
LB: loop body
LE: loop exit
PB: predicated region body
PF: predicated region fallthrough
CT: control target
= control target key end

     0   :  { %8 = vsyncpa [#allocation3], 0  ;;  %s164_s0 = inlined_call_operand.hbm [shape: f32[4,128], index: 0, kind: input, shape index: {}]   ;;  %s165_s1 = inlined_call_operand.vmem [shape: f32[1,128], index: 1, kind: input, shape index: {}]   ;;  %s166_s2 = inlined_call_operand.vmem [shape: f32[1,128], index: 2, kind: input, shape index: {}]   ;;  %s167_s3 = inlined_call_operand.hbm [shape: f32[4,128], index: 3, kind: output, shape index: {}]  }
   0x1   :  { %9 = vsyncpa [#allocation4], 0  ;;  %s112_s12 = smov [#allocation2]   ;;  %s64_s16 = scalar_lea.hbm %s164_s0, 64 }
   0x2   :  { %s16_s13 = sshll.u32 %s112_s12, 4  ;;  %p65_p0 = scmp.ne.s32.totalorder %s164_s0, %s64_s16  ;;  %s17_s13 = int_to_ptr.vmem [resolvable:$true] %s16_s13 }
   0x3   :  { %p68_p1 = scmp.lt.u32.totalorder %s64_s16, %s164_s0 }
   0x5   :  { %p70_p2 = pnand %p68_p1, %p65_p0 }
   0x7   :  { %73 = shalt.err (!%p70_p2)
}
   0x8   :  { %s74_s21 = scalar_lea.vmem %s17_s13, 64  ;;  %p79_p4 = scmp.lt.s32.totalorder %s17_s13, %s17_s13 }
   0x9   :  { %p75_p3 = scmp.ne.s32.totalorder %s17_s13, %s74_s21  ;;  %p80_p5 = scmp.lt.s32.totalorder %s74_s21, %s74_s21 }
   0xb   :  { %p81_p6 = por %p80_p5, %p79_p4 }
   0xd   :  { %p82_p7 = pnand %p81_p6, %p75_p3 }
   0xf   :  { %85 = shalt.err (!%p82_p7)
}
  0x10   :  { %19 = dma.hbm_to_vmem [thread:$0]  %s164_s0, 64, %s17_s13, [#allocation3]  }
  0x11   :  { %108 = dma.done.wait [#allocation3], 64  }
  0x12   :  { %109 = vsyncadd [#allocation3], 4294967232  ;;  %s113_s24 = smov [#allocation5]   ;;  %v27_v0 = vld [vmem:[#allocation2] sm:$0xf] }
  0x13   :  { %s51_s25 = sshll.u32 %s113_s24, 4  ;;  %v60_v1 = vld [vmem:[%s165_s1] ss:$0 sm:$0xff]  ;;  %s52_s25 = int_to_ptr.vmem [resolvable:$true] %s51_s25 }
  0x14   :  { %v61_v2 = vld [vmem:[%s166_s2] ss:$0 sm:$0xff]  ;;  %v35_v3 = vmul.f32 %v60_v1, %v27_v0  ;;  %s86_s30 = scalar_lea.vmem %s52_s25, 64  ;;  %p91_p9 = scmp.lt.s32.totalorder %s52_s25, %s52_s25 }
  0x15   :  { %p87_p8 = scmp.ne.s32.totalorder %s52_s25, %s86_s30  ;;  %p92_p10 = scmp.lt.s32.totalorder %s86_s30, %s86_s30 }
  0x16   :  { %v43_v4 = vadd.f32 %v61_v2, %v35_v3 }
  0x17   :  { %p93_p11 = por %p92_p10, %p91_p9 }
  0x18   :  { %44 = vst [vmem:[#allocation5] sm:$0xf] %v43_v4 }
  0x19   :  { %p94_p12 = pnand %p93_p11, %p87_p8 }
  0x1b   :  { %97 = shalt.err (!%p94_p12)
}
  0x1c   :  { %s98_s5 = scalar_lea.hbm %s167_s3, 64 }
  0x1d   :  { %p99_p13 = scmp.ne.s32.totalorder %s167_s3, %s98_s5  ;;  %p102_p0 = scmp.lt.u32.totalorder %s98_s5, %s167_s3 }
  0x1f   :  { %p104_p1 = pnand %p102_p0, %p99_p13 }
  0x21   :  { %107 = shalt.err (!%p104_p1)
}
  0x22   :  { %54 = dma.vmem_to_hbm [thread:$0]  %s52_s25, 64, %s167_s3, [#allocation4]  }
  0x23   :  { %110 = dma.done.wait [#allocation4], 64  }
  0x24   :  { %111 = vsyncadd [#allocation4], 4294967232 }
  0x25   :  { %58 = vsyncpa [#allocation3], 1 }
  0x26   :  { %59 = vsyncpa [#allocation4], 1 }

</bundles_post_ra>
